<compile_context>
chip_gen: v6e
topology: v6e:2x2x1
jax: 0.10.0
libtpu: 0.0.40
codegen_flags: <defaults>
</compile_context>

<pallas_src>
import functools

import jax
import jax.numpy as jnp
from jax import lax
from jax.experimental import pallas as pl
from jax.experimental.pallas import tpu as pltpu


_MASK = -1.0e30              # f32 fill for masked class columns / running-max init
_OUT_SUB, _OUT_LANE = 8, 128  # lane-dense (8,128) partial-sum output block


def _round_up(x, m):
    return ((x + m - 1) // m) * m


def _cdiv(a, b):
    return (a + b - 1) // b


def _vmem_capacity_bytes():
    # Generation-aware budget (v5e/v6e: 128 MiB, v7x: 64 MiB per TensorCore).
    try:
        return int(pltpu.get_tpu_info().vmem_capacity_bytes)
    except Exception:
        return 64 * 1024 * 1024  # assume the smallest (v7x per-TC)


def _choose_tiles(n, c, itemsize, *, max_tile_c=None, max_tile_n=None):
    cap = _vmem_capacity_bytes()
    budget = int(cap * 0.45)          # for sizing the row tile
    vmem_limit = int(cap * 0.75)      # scoped VMEM limit handed to Mosaic

    # Class (lane) tile: full C when it fits a single block, else 128-multiples.
    c_cap = 2048 if max_tile_c is None else max_tile_c
    if c <= c_cap:
        tile_c = c
    else:
        tile_c = max(128, (c_cap // 128) * 128)

    # Row (sublane) tile: as large as the VMEM budget allows.
    pack = max(8, 32 // max(1, itemsize))          # f32:8, bf16:16, int8/fp8:32
    per_row = 2 * tile_c * itemsize + 3 * tile_c * 4 + 64
    tile_n = budget // per_row
    tile_n = min(tile_n, 32768, _round_up(n, pack))
    if max_tile_n is not None:
        tile_n = min(tile_n, max_tile_n)
    tile_n = max(pack, (tile_n // pack) * pack)

    # v7x: keep >= 2 grid steps on the "parallel" batch axis when possible so
    # both TensorCores get work (no effect on single-TC v5e/v6e).
    if _cdiv(n, tile_n) < 2 and n > pack:
        tile_n = max(pack, _round_up(_cdiv(n, 2), pack))

    return tile_n, tile_c, vmem_limit


def _ce_loss_kernel(logits_ref, xt_ref, w_ref, out_ref, m_sc, l_sc, *, n, c):
    # logits_ref : (Tn, Tc) native dtype (f32 / bf16 / ...), one C chunk
    # xt_ref     : (Tn, 1)  f32 target logit x[i, y_i]
    # w_ref      : (Tn, 1)  f32 per-sample class weight weight_CE[y_i]
    # out_ref    : (8, 128) f32 lane-dense block; [0,0] = partial weighted-NLL sum
    # m_sc, l_sc : (Tn, 1)  f32 running max / running sum (online logsumexp)
    ni = pl.program_id(0)
    ci = pl.program_id(1)
    tile_n, tile_c = logits_ref.shape

    @pl.when(ci == 0)
    def _():
        m_sc[...] = jnp.full_like(m_sc, _MASK)
        l_sc[...] = jnp.zeros_like(l_sc)

    x = logits_ref[...].astype(jnp.float32)                        # (Tn, Tc)
    if c % tile_c != 0:
        # ragged last C block: mask out-of-range class columns (static check)
        col = ci * tile_c + lax.broadcasted_iota(jnp.int32, (tile_n, tile_c), 1)
        x = jnp.where(col < c, x, _MASK)

    m_prev = m_sc[...]                                             # (Tn, 1)
    m_new = jnp.maximum(m_prev, jnp.max(x, axis=-1, keepdims=True))
    alpha = jnp.exp(m_prev - m_new)
    l_sc[...] = alpha * l_sc[...] + jnp.sum(jnp.exp(x - m_new),
                                            axis=-1, keepdims=True)
    m_sc[...] = m_new

    @pl.when(ci == pl.num_programs(1) - 1)
    def _():
        lse = m_sc[...] + jnp.log(l_sc[...])                       # (Tn, 1)
        loss = w_ref[...] * (lse - xt_ref[...])                    # (Tn, 1)
        if n % tile_n != 0:
            # ragged last N block: zero out garbage rows before the reduction
            row = ni * tile_n + lax.broadcasted_iota(jnp.int32, (tile_n, 1), 0)
            loss = jnp.where(row < n, loss, 0.0)
        s = jnp.sum(loss, axis=0, keepdims=True)                   # (1, 1)
        rr = lax.broadcasted_iota(jnp.int32, (_OUT_SUB, _OUT_LANE), 0)
        cc = lax.broadcasted_iota(jnp.int32, (_OUT_SUB, _OUT_LANE), 1)
        sel = ((rr == 0) & (cc == 0)).astype(jnp.float32)
        out_ref[...] = sel * s                                     # lane-dense store


def ce_loss(predicted, labels, weight_CE, *, max_tile_c=None, max_tile_n=None):
    """Weighted cross-entropy, matching nn.CrossEntropyLoss(weight=weight_CE).

    predicted : (N, C) float logits (any float dtype; kept native on the wire)
    labels    : (N,)   int class indices
    weight_CE : (C,)   float per-class weights
    returns   : scalar float32
    """
    n, c = predicted.shape
    itemsize = jnp.dtype(predicted.dtype).itemsize
    labels = labels.astype(jnp.int32)

    # --- wrapper-side O(N) gathers ----------------------------------------
    x_t = jnp.take_along_axis(predicted, labels[:, None], axis=1).astype(jnp.float32)
    w_i = weight_CE.astype(jnp.float32)[labels][:, None]           # (N, 1)

    tile_n, tile_c, vmem_limit = _choose_tiles(
        n, c, itemsize, max_tile_c=max_tile_c, max_tile_n=max_tile_n)
    gn = _cdiv(n, tile_n)
    gc = _cdiv(c, tile_c)

    kernel = functools.partial(_ce_loss_kernel, n=n, c=c)

    bytes_accessed = n * c * itemsize + n * 8 + gn * _OUT_SUB * _OUT_LANE * 4

    partial = pl.pallas_call(
        kernel,
        out_shape=jax.ShapeDtypeStruct((gn * _OUT_SUB, _OUT_LANE), jnp.float32),
        grid=(gn, gc),
        in_specs=[
            pl.BlockSpec((tile_n, tile_c), lambda i, j: (i, j)),
            pl.BlockSpec((tile_n, 1), lambda i, j: (i, 0)),
            pl.BlockSpec((tile_n, 1), lambda i, j: (i, 0)),
        ],
        out_specs=pl.BlockSpec((_OUT_SUB, _OUT_LANE), lambda i, j: (i, 0)),
        scratch_shapes=[
            pltpu.VMEM((tile_n, 1), jnp.float32),   # running max
            pltpu.VMEM((tile_n, 1), jnp.float32),   # running sum
        ],
        compiler_params=pltpu.CompilerParams(
            dimension_semantics=("parallel", "arbitrary"),
            vmem_limit_bytes=vmem_limit,
        ),
        cost_estimate=pl.CostEstimate(
            flops=6 * n * c,
            transcendentals=n * c,
            bytes_accessed=bytes_accessed,
        ),
    )(predicted, x_t, w_i)

    num = jnp.sum(partial)    # per-tile partial sums (rest of each block is 0)
    den = jnp.sum(w_i)        # sum of selected class weights
    # TODO(synk): den == 0 (all selected class weights zero) yields NaN, same as PyTorch.
    return (num / den).astype(jnp.float32)


def _reference(predicted, labels, weight_CE):
    logp = jax.nn.log_softmax(predicted.astype(jnp.float32), axis=-1)
    nll = -logp[jnp.arange(predicted.shape[0]), labels]
    w = weight_CE.astype(jnp.float32)[labels]
    return jnp.sum(w * nll) / jnp.sum(w)


if __name__ == "__main__":
    key = jax.random.PRNGKey(0)

    # --- test 1: small aligned shapes, f32, single grid step ---------------
    k1, k2 = jax.random.split(key)
    N, C = 8, 16
    predicted = jax.random.normal(k1, (N, C), dtype=jnp.float32)
    labels = jax.random.randint(k2, (N,), 0, C, dtype=jnp.int32)
    weight_CE = (jnp.arange(C, dtype=jnp.float32) + 1.0) / C

    loss = ce_loss(predicted, labels, weight_CE)
    jax.block_until_ready(loss)
    ref = _reference(predicted, labels, weight_CE)
    assert jnp.allclose(loss, ref, rtol=1e-5, atol=1e-5), (loss, ref)

    # --- test 2: ragged N + bf16 logits (ragged last row block, 2 TC steps) -
    k3, k4 = jax.random.split(k1)
    N2, C2 = 37, 21
    predicted2 = jax.random.normal(k3, (N2, C2), dtype=jnp.float32).astype(jnp.bfloat16)
    labels2 = jax.random.randint(k4, (N2,), 0, C2, dtype=jnp.int32)
    weight_CE2 = (jnp.arange(C2, dtype=jnp.float32) + 1.0) / C2

    loss2 = ce_loss(predicted2, labels2, weight_CE2)
    jax.block_until_ready(loss2)
    ref2 = _reference(predicted2, labels2, weight_CE2)
    assert jnp.allclose(loss2, ref2, rtol=1e-4, atol=1e-4), (loss2, ref2)

    # --- test 3: force C tiling (online logsumexp path, ragged last C block) -
    k5, k6 = jax.random.split(k3)
    N3, C3 = 24, 300
    predicted3 = jax.random.normal(k5, (N3, C3), dtype=jnp.float32)
    labels3 = jax.random.randint(k6, (N3,), 0, C3, dtype=jnp.int32)
    weight_CE3 = (jnp.arange(C3, dtype=jnp.float32) + 1.0) / C3

    loss3 = ce_loss(predicted3, labels3, weight_CE3, max_tile_c=128, max_tile_n=8)
    jax.block_until_ready(loss3)
    ref3 = _reference(predicted3, labels3, weight_CE3)
    assert jnp.allclose(loss3, ref3, rtol=1e-5, atol=1e-5), (loss3, ref3)

    print("KERNEL_OK")
</pallas_src>

<mosaic_0001>
module attributes {stable_mosaic.version = 11 : i64} {
  func.func @_ce_loss_kernel(%arg0: i32, %arg1: i32, %arg2: memref<8x16xf32, #tpu.memory_space<vmem>>, %arg3: memref<8x1xf32, #tpu.memory_space<vmem>>, %arg4: memref<8x1xf32, #tpu.memory_space<vmem>>, %arg5: memref<8x128xf32, #tpu.memory_space<vmem>>, %arg6: memref<8x1xf32, #tpu.memory_space<vmem>>, %arg7: memref<8x1xf32, #tpu.memory_space<vmem>>) attributes {dimension_semantics = [#tpu.dimension_semantics<parallel>, #tpu.dimension_semantics<arbitrary>], iteration_bounds = array<i64: 1, 1>, scalar_prefetch = 0 : i64, scratch_operands = 2 : i64, tpu.core_type = #tpu.core_type<tc>, window_params = [{transform_indices = @transform_0, window_bounds = array<i64: 8, 16>}, {transform_indices = @transform_1, window_bounds = array<i64: 8, 1>}, {transform_indices = @transform_2, window_bounds = array<i64: 8, 1>}, {transform_indices = @transform_3, window_bounds = array<i64: 8, 128>}]} {
    %c0_i32 = arith.constant 0 : i32
    %0 = arith.cmpi eq, %arg1, %c0_i32 : i32
    %1 = arith.extui %0 : i1 to i32
    %c0_i32_0 = arith.constant 0 : i32
    %2 = arith.cmpi ne, %1, %c0_i32_0 : i32
    scf.if %2 {
      %cst_13 = arith.constant -1.000000e+30 : f32
      %23 = vector.broadcast %cst_13 : f32 to vector<8x1xf32>
      %c0_14 = arith.constant 0 : index
      %c0_15 = arith.constant 0 : index
      %24 = vector.load %arg6[%c0_14, %c0_15] : memref<8x1xf32, #tpu.memory_space<vmem>>, vector<8x1xf32>
      tpu.vector_store %arg6[%c0_14, %c0_15], %23 {strides = array<i32>} : memref<8x1xf32, #tpu.memory_space<vmem>>, vector<8x1xf32>,
      %cst_16 = arith.constant 0.000000e+00 : f32
      %25 = vector.broadcast %cst_16 : f32 to vector<8x1xf32>
      %c0_17 = arith.constant 0 : index
      %c0_18 = arith.constant 0 : index
      %26 = vector.load %arg7[%c0_17, %c0_18] : memref<8x1xf32, #tpu.memory_space<vmem>>, vector<8x1xf32>
      tpu.vector_store %arg7[%c0_17, %c0_18], %25 {strides = array<i32>} : memref<8x1xf32, #tpu.memory_space<vmem>>, vector<8x1xf32>,
    } else {
    }
    %c0 = arith.constant 0 : index
    %c0_1 = arith.constant 0 : index
    %3 = vector.load %arg2[%c0, %c0_1] : memref<8x16xf32, #tpu.memory_space<vmem>>, vector<8x16xf32>
    %c0_2 = arith.constant 0 : index
    %c0_3 = arith.constant 0 : index
    %4 = vector.load %arg6[%c0_2, %c0_3] : memref<8x1xf32, #tpu.memory_space<vmem>>, vector<8x1xf32>
    %cst = arith.constant dense<0xFF800000> : vector<8xf32>
    %5 = vector.multi_reduction <maximumf>, %3, %cst [1] : vector<8x16xf32> to vector<8xf32>
    %6 = vector.shape_cast %5 : vector<8xf32> to vector<8x1xf32>
    %7 = arith.maximumf %4, %6 : vector<8x1xf32>
    %8 = arith.subf %4, %7 : vector<8x1xf32>
    %9 = math.exp %8 : vector<8x1xf32>
    %c0_4 = arith.constant 0 : index
    %c0_5 = arith.constant 0 : index
    %10 = vector.load %arg7[%c0_4, %c0_5] : memref<8x1xf32, #tpu.memory_space<vmem>>, vector<8x1xf32>
    %11 = arith.mulf %9, %10 : vector<8x1xf32>
    %12 = vector.broadcast %7 : vector<8x1xf32> to vector<8x16xf32>
    %13 = arith.subf %3, %12 : vector<8x16xf32>
    %14 = math.exp %13 : vector<8x16xf32>
    %cst_6 = arith.constant dense<0.000000e+00> : vector<8xf32>
    %15 = vector.multi_reduction <add>, %14, %cst_6 [1] : vector<8x16xf32> to vector<8xf32>
    %16 = vector.shape_cast %15 : vector<8xf32> to vector<8x1xf32>
    %17 = arith.addf %11, %16 : vector<8x1xf32>
    %c0_7 = arith.constant 0 : index
    %c0_8 = arith.constant 0 : index
    %18 = vector.load %arg7[%c0_7, %c0_8] : memref<8x1xf32, #tpu.memory_space<vmem>>, vector<8x1xf32>
    tpu.vector_store %arg7[%c0_7, %c0_8], %17 {strides = array<i32>} : memref<8x1xf32, #tpu.memory_space<vmem>>, vector<8x1xf32>,
    %c0_9 = arith.constant 0 : index
    %c0_10 = arith.constant 0 : index
    %19 = vector.load %arg6[%c0_9, %c0_10] : memref<8x1xf32, #tpu.memory_space<vmem>>, vector<8x1xf32>
    tpu.vector_store %arg6[%c0_9, %c0_10], %7 {strides = array<i32>} : memref<8x1xf32, #tpu.memory_space<vmem>>, vector<8x1xf32>,
    %c0_i32_11 = arith.constant 0 : i32
    %20 = arith.cmpi eq, %arg1, %c0_i32_11 : i32
    %21 = arith.extui %20 : i1 to i32
    %c0_i32_12 = arith.constant 0 : i32
    %22 = arith.cmpi ne, %21, %c0_i32_12 : i32
    scf.if %22 {
      %c0_13 = arith.constant 0 : index
      %c0_14 = arith.constant 0 : index
      %23 = vector.load %arg6[%c0_13, %c0_14] : memref<8x1xf32, #tpu.memory_space<vmem>>, vector<8x1xf32>
      %c0_15 = arith.constant 0 : index
      %c0_16 = arith.constant 0 : index
      %24 = vector.load %arg7[%c0_15, %c0_16] : memref<8x1xf32, #tpu.memory_space<vmem>>, vector<8x1xf32>
      %25 = math.log %24 : vector<8x1xf32>
      %26 = arith.addf %23, %25 : vector<8x1xf32>
      %c0_17 = arith.constant 0 : index
      %c0_18 = arith.constant 0 : index
      %27 = vector.load %arg4[%c0_17, %c0_18] : memref<8x1xf32, #tpu.memory_space<vmem>>, vector<8x1xf32>
      %c0_19 = arith.constant 0 : index
      %c0_20 = arith.constant 0 : index
      %28 = vector.load %arg3[%c0_19, %c0_20] : memref<8x1xf32, #tpu.memory_space<vmem>>, vector<8x1xf32>
      %29 = arith.subf %26, %28 : vector<8x1xf32>
      %30 = arith.mulf %27, %29 : vector<8x1xf32>
      %cst_21 = arith.constant dense<0.000000e+00> : vector<1xf32>
      %31 = vector.multi_reduction <add>, %30, %cst_21 [0] : vector<8x1xf32> to vector<1xf32>
      %32 = vector.shape_cast %31 : vector<1xf32> to vector<1x1xf32>
      %33 = tpu.iota {dimensions = array<i32: 0>} : vector<8x128xi32>
      %34 = tpu.iota {dimensions = array<i32: 1>} : vector<8x128xi32>
      %c0_i32_22 = arith.constant 0 : i32
      %35 = vector.broadcast %c0_i32_22 : i32 to vector<8x128xi32>
      %36 = arith.cmpi eq, %33, %35 : vector<8x128xi32>
      %c0_i32_23 = arith.constant 0 : i32
      %37 = vector.broadcast %c0_i32_23 : i32 to vector<8x128xi32>
      %38 = arith.cmpi eq, %34, %37 : vector<8x128xi32>
      %39 = arith.andi %36, %38 : vector<8x128xi1>
      %40 = arith.extui %39 : vector<8x128xi1> to vector<8x128xi32>
      %41 = arith.sitofp %40 : vector<8x128xi32> to vector<8x128xf32>
      %42 = vector.broadcast %32 : vector<1x1xf32> to vector<8x128xf32>
      %43 = arith.mulf %41, %42 : vector<8x128xf32>
      %c0_24 = arith.constant 0 : index
      %c0_25 = arith.constant 0 : index
      %44 = vector.load %arg5[%c0_24, %c0_25] : memref<8x128xf32, #tpu.memory_space<vmem>>, vector<8x128xf32>
      tpu.vector_store %arg5[%c0_24, %c0_25], %43 {strides = array<i32>} : memref<8x128xf32, #tpu.memory_space<vmem>>, vector<8x128xf32>,
    } else {
    }
    return
  }
  func.func @transform_0(%arg0: i32, %arg1: i32) -> (i32, i32) {
    %c0_i32 = arith.constant 0 : i32
    return %arg0, %arg1 : i32, i32
  }
  func.func @transform_1(%arg0: i32, %arg1: i32) -> (i32, i32) {
    %c0_i32 = arith.constant 0 : i32
    %c0_i32_0 = arith.constant 0 : i32
    return %arg0, %c0_i32 : i32, i32
  }
  func.func @transform_2(%arg0: i32, %arg1: i32) -> (i32, i32) {
    %c0_i32 = arith.constant 0 : i32
    %c0_i32_0 = arith.constant 0 : i32
    return %arg0, %c0_i32 : i32, i32
  }
  func.func @transform_3(%arg0: i32, %arg1: i32) -> (i32, i32) {
    %c0_i32 = arith.constant 0 : i32
    %c0_i32_0 = arith.constant 0 : i32
    return %arg0, %c0_i32 : i32, i32
  }
}

</mosaic_0001>

<bundles_post_ra>
// kernel: tpu_custom_call.1
= control target key start
LH: loop header
LB: loop body
LE: loop exit
PB: predicated region body
PF: predicated region fallthrough
CT: control target
= control target key end

     0   :  { %vm24_vm0 = vcmask 130048   ;;  %s176_s0 = inlined_call_operand.vmem [shape: f32[8,16], index: 0, kind: input, shape index: {}]   ;;  %s177_s1 = inlined_call_operand.vmem [shape: f32[8,1], index: 1, kind: input, shape index: {}]   ;;  %s178_s2 = inlined_call_operand.vmem [shape: f32[8,1], index: 2, kind: input, shape index: {}]   ;;  %s179_s3 = inlined_call_operand.hbm [shape: f32[8,128], index: 3, kind: output, shape index: {}]  }
   0x1   :  { %v22_v0 = vld [vmem:[%s176_s0] sm:$0xff] }
   0x2   :  { %8 = vsyncpa [#allocation5], 0  ;;  %v25_v1 = vsel %vm24_vm0, %v22_v0, -inf  ;;  %vm19_vm1 = vcmask 7168   ;;  %v133_v2 = vmov -1e+30   ;;  %v68_v36 = vlaneseq }
   0x3   :  { %26 = vmax.xlane.f32.xlu0 %v25_v1  ;;  %20 = vst.msk [vmem:[#allocation2] sm:$0xff] %vm19_vm1, %v133_v2  ;;  %v134_v3 = vmov 0   ;;  %v135_v4 = vmov 0.0   ;;  %v58_v24 = vld [vmem:[%s177_s1] sm:$0xff]  ;;  %s136_s1 = smov [#allocation4]  }
   0x4   :  { %103 = vset.pattern.permute.xlu0 %v134_v3  ;;  %104 = vset.pattern.permute.xlu1 %v134_v3  ;;  %21 = vst.msk [vmem:[#allocation3] sm:$0xff] %vm19_vm1, %v135_v4  ;;  %v57_v26 = vld [vmem:[%s178_s2] sm:$0xff]  ;;  %v69_v37 = vshrl.u32 %v68_v36, 7  ;;  %v71_v38 = vand.u32 127, %v68_v36  ;;  %s90_s2 = sshll.u32 %s136_s1, 4  ;;  %s91_s2 = int_to_ptr.vmem [resolvable:$true] %s90_s2 }
   0x5   :  { %s111_s17 = scalar_lea.vmem %s91_s2, 128  ;;  %p116_p1 = scmp.lt.s32.totalorder %s91_s2, %s91_s2 }
   0x6   :  { %vm72_vm2 = vcmp.eq.s32.totalorder %v69_v37, 0  ;;  %vm73_vm3 = vcmp.eq.s32.totalorder %v71_v38, 0  ;;  %p112_p0 = scmp.ne.s32.totalorder %s91_s2, %s111_s17  ;;  %p117_p2 = scmp.lt.s32.totalorder %s111_s17, %s111_s17 }
   0x7   :  { %vm74_vm4 = vmand %vm72_vm2, %vm73_vm3 }
   0x8   :  { %v98_v39 = vsel %vm74_vm4, 1.0, %v135_v4  ;;  %p118_p3 = por %p117_p2, %p116_p1 }
   0xa   :  { %v23_v5 = vld [vmem:[#allocation2] sm:$0xff]  ;;  %p119_p4 = pnand %p118_p3, %p112_p0 }
   0xb   :  { %v32_v16 = vld [vmem:[#allocation3] sm:$0xff] }
  0x8c   :  { %v27_v6 = vpop.xlane.xlu0 %26 }
  0x8d   :  { %v28_v7 = vmax.f32 %v23_v5, %v27_v6 }
  0x8f   :  { %v29_v8 = vsub.f32 %v23_v5, %v28_v7  ;;  %48 = vst.msk [vmem:[#allocation2] sm:$0xff] %vm19_vm1, %v28_v7  ;;  %36 = vperm.xlu0 %103, %v28_v7  }
  0x91   :  { %v30_v14 = vmul.f32 1.442695, %v29_v8 }
  0x96   :  { %v52_v23 = vld [vmem:[#allocation2] sm:$0xff] }
 0x10a   :  { %v37_v9 = vpop.permute.xlu0 %36 }
 0x10b   :  { %v39_v10 = vsub.f32 %v22_v0, %v37_v9 }
 0x10d   :  { %v40_v11 = vmul.f32 1.442695, %v39_v10 }
 0x10f   :  { %105 = vpow2.f32 %v40_v11 }
 0x110   :  { %107 = vpow2.f32 %v30_v14 }
 0x11c   :  { %v106_v12 = vpop.eup %105 }
 0x11d   :  { %v42_v13 = vsel %vm24_vm0, %v106_v12, 0.0  ;;  %v108_v15 = vpop.eup %107 }
 0x11e   :  { %43 = vadd.xlane.f32.xlu1 %v42_v13  ;;  %v33_v17 = vmul.f32 %v108_v15, %v32_v16 }
 0x1a7   :  { %v44_v18 = vpop.xlane.xlu1 %43 }
 0x1a8   :  { %v45_v19 = vadd.f32 %v44_v18, %v33_v17 }
 0x1aa   :  { %47 = vst.msk [vmem:[#allocation3] sm:$0xff] %vm19_vm1, %v45_v19 }
 0x1b1   :  { %v53_v20 = vld [vmem:[#allocation3] sm:$0xff] }
 0x1b2   :  { %109 = vlog2.f32 %v53_v20 }
 0x1bf   :  { %v110_v21 = vpop.eup %109 }
 0x1c0   :  { %v55_v22 = vmul.f32 0.6931472, %v110_v21 }
 0x1c2   :  { %v56_v25 = vadd.f32 %v55_v22, %v52_v23 }
 0x1c4   :  { %v59_v27 = vsub.f32 %v56_v25, %v58_v24 }
 0x1c6   :  { %v60_v28 = vmul.f32 %v59_v27, %v57_v26 }
 0x1c8   :  { %v61_v29 = vsel %vm19_vm1, %v60_v28, 0.0 }
 0x1c9   :  { %v62_v30 = vrot.slane %v61_v29, 4 }
 0x1cb   :  { %v63_v31 = vadd.f32 %v62_v30, %v61_v29 }
 0x1cd   :  { %v64_v32 = vrot.slane %v63_v31, 2 }
 0x1cf   :  { %v65_v33 = vadd.f32 %v64_v32, %v63_v31 }
 0x1d1   :  { %v66_v34 = vrot.slane %v65_v33, 1 }
 0x1d3   :  { %v67_v35 = vadd.f32 %v66_v34, %v65_v33 }
 0x1d5   :  { %79 = vperm.xlu1 %104, %v67_v35  }
 0x250   :  { %v80_v40 = vpop.permute.xlu1 %79 }
 0x251   :  { %v82_v41 = vmul.f32 %v98_v39, %v80_v40 }
 0x253   :  { %83 = vst [vmem:[#allocation4] sm:$0xff] %v82_v41 }
 0x254   :  { %122 = shalt.err (!%p119_p4)
}
 0x255   :  { %93 = dma.vmem_to_hbm [thread:$0]  %s91_s2, 128, %s179_s3, [#allocation5]  }
 0x256   :  { %131 = dma.done.wait [#allocation5], 128  }
 0x257   :  { %132 = vsyncadd [#allocation5], 4294967168 }
 0x258   :  { %97 = vsyncpa [#allocation5], 1 }

</bundles_post_ra>
